<compile_context>
chip_gen: v7x
topology: tpu7x:2x2x1
jax: 0.10.0
libtpu: 0.0.40
codegen_flags: <defaults>
</compile_context>

<pallas_src>
import functools

import jax
import jax.numpy as jnp
from jax.experimental import pallas as pl
from jax.experimental.pallas import tpu as pltpu


def _conv_matmul_kernel(w_ref, p_ref, o_ref):
    # w_ref : (Mpad, Kpad)      bf16  folded conv weights; row m = cout*3 + rep,
    #                                 bias folded in at column K.
    # p_ref : (Kpad, row_tile)  bf16  im2col^T patch tile (output voxels on lanes).
    # o_ref : (Mpad, row_tile)  bf16  channel-major output tile, all 3 replicas.
    o_ref[...] = jnp.dot(
        w_ref[...], p_ref[...], preferred_element_type=jnp.float32
    ).astype(o_ref.dtype)


def _round_up(a, b):
    return ((a + b - 1) // b) * b


@functools.partial(jax.jit, static_argnames=("row_tile",))
def down_shifted_conv3d_old(x_ncdhw, v, g, bias, *, row_tile=None):
    """Forward pass of DownShiftedConv3dold (stride fixed to (1,1,1), the default).

    x_ncdhw : (N, Cin, D, H, W)
    v       : (Cout, Cin, Dk, Hk, Wk)   weight_norm direction parameter
    g       : (Cout, 1, 1, 1, 1)        weight_norm magnitude parameter
    bias    : (Cout,)
    returns : (N, Cout, 3*Dout, H, W)   with Dout = D - Dk + 1
              (Wout == W only for odd Wk, matching the PyTorch module.)
    """
    REP = 3

    # weight_norm: weight = g * v / ||v|| (norm over all dims except dim 0).
    norm = jnp.sqrt(jnp.sum(v * v, axis=(1, 2, 3, 4), keepdims=True))
    w = g * v / norm                                  # (Cout, Cin, Dk, Hk, Wk) f32
    Cout, Cin, Dk, Hk, Wk = w.shape
    N = x_ncdhw.shape[0]

    # DownShiftedConv3dSqueeze padding (NCDHW): W symmetric, H top-only, D none.
    pw = (Wk - 1) // 2
    xp = jnp.pad(x_ncdhw.astype(jnp.bfloat16),
                 ((0, 0), (0, 0), (0, 0), (Hk - 1, 0), (pw, pw)))
    Dp, Hp, Wp = xp.shape[2], xp.shape[3], xp.shape[4]
    Dout, Hout, Wout = Dp - Dk + 1, Hp - Hk + 1, Wp - Wk + 1
    rows = Dout * Hout * Wout
    K = Cin * Dk * Hk * Wk
    M = Cout * REP

    # Lane/sublane-dense padding: K (+1 bias row) -> mult of 128, M -> mult of 8,
    # rows -> mult of row_tile (itself a mult of 128).
    Kpad = _round_up(K + 1, 128)
    Mpad = _round_up(M, 8)
    rows_pad_min = _round_up(rows, 128)
    if row_tile is None:
        # VMEM per pipelined buffer ~= Kpad * row_tile * 2B; 4096 keeps it small
        # even at production K on v5e's 16 MiB / v7x's 32 MiB scoped defaults.
        row_tile = min(rows_pad_min, 4096)
    else:
        row_tile = min(_round_up(max(int(row_tile), 128), 128), rows_pad_min)
    rows_pad = _round_up(rows, row_tile)
    num_row_tiles = rows_pad // row_tile

    # im2col^T, channel-major (no activation relayout):
    #   pT[n, tap*Cin + cin, d*Hout*Wout + h*Wout + w] = xp[n, cin, d+kd, h+kh, w+kw]
    # plus a ones row at index K (bias fold) and zero rows up to Kpad.
    taps = [
        xp[:, :, kd:kd + Dout, kh:kh + Hout, kw:kw + Wout].reshape(N, Cin, rows)
        for kd in range(Dk) for kh in range(Hk) for kw in range(Wk)
    ]
    taps.append(jnp.ones((N, 1, rows), jnp.bfloat16))            # bias "1" row
    if Kpad > K + 1:
        taps.append(jnp.zeros((N, Kpad - K - 1, rows), jnp.bfloat16))
    pT = jnp.concatenate(taps, axis=1)                           # (N, Kpad, rows)
    if rows_pad > rows:
        pT = jnp.pad(pT, ((0, 0), (0, 0), (0, rows_pad - rows)))
    # TODO(synk): for production-sized D/H/W move im2col into the kernel (pass xp
    # via memory_space=pl.ANY / a spatial BlockSpec and form taps from a
    # VMEM-resident block) to avoid the ~Dk*Hk*Wk-amplified HBM activation copy.

    # Weights: (Cout, K) in the same (tap, cin) column order; each row repeated
    # REP times (interleaved as cout*REP + rep) so one matmul emits all three
    # depth replicas; bias folded in as column K.  Padded rows/cols are zero.
    w_mat = jnp.transpose(w, (0, 2, 3, 4, 1)).reshape(Cout, K)
    w_rep = jnp.repeat(w_mat, REP, axis=0)                        # (M, K)
    b_rep = jnp.repeat(bias.astype(w_rep.dtype), REP)[:, None]    # (M, 1)
    wk = jnp.concatenate([w_rep, b_rep], axis=1)                  # (M, K+1)
    wk = jnp.pad(wk, ((0, Mpad - M), (0, Kpad - K - 1))).astype(jnp.bfloat16)

    out = pl.pallas_call(
        _conv_matmul_kernel,
        out_shape=jax.ShapeDtypeStruct((N, Mpad, rows_pad), jnp.bfloat16),
        grid=(N, num_row_tiles),
        in_specs=[
            pl.BlockSpec((Mpad, Kpad), lambda n, t: (0, 0)),
            pl.BlockSpec((None, Kpad, row_tile), lambda n, t: (n, 0, t)),
        ],
        out_specs=pl.BlockSpec((None, Mpad, row_tile), lambda n, t: (n, 0, t)),
        compiler_params=pltpu.CompilerParams(
            dimension_semantics=("parallel", "parallel")
        ),
    )(wk, pT)

    # Epilogue: drop padding and split rows back into (D, H, W).  The replica
    # axis (interleaved as cout*REP + rep) merges with Dout into 3*Dout directly
    # -- no transpose -- matching torch.cat([y, y, y], dim=2).
    out = out[:, :M, :rows]                                       # (N, Cout*3, rows)
    y = out.reshape(N, Cout, REP * Dout, Hout, Wout).astype(x_ncdhw.dtype)
    return y                                                      # (N, Cout, 3*Dout, H, W)


def _reference(x_ncdhw, v, g, bias):
    """Pure-JAX f32 reference using lax.conv_general_dilated (matches PyTorch)."""
    norm = jnp.sqrt(jnp.sum(v * v, axis=(1, 2, 3, 4), keepdims=True))
    w = g * v / norm
    Cout, Cin, Dk, Hk, Wk = w.shape
    pw = (Wk - 1) // 2
    xp = jnp.pad(x_ncdhw, ((0, 0), (0, 0), (0, 0), (Hk - 1, 0), (pw, pw)))
    y = jax.lax.conv_general_dilated(
        xp, w, window_strides=(1, 1, 1), padding="VALID",
        dimension_numbers=("NCDHW", "OIDHW", "NCDHW"),
    ) + bias.reshape(1, Cout, 1, 1, 1)
    return jnp.concatenate([y, y, y], axis=2)


if __name__ == "__main__":
    key = jax.random.PRNGKey(0)
    k1, k2, k3 = jax.random.split(key, 3)

    N, Cin, Cout = 2, 4, 8
    D = H = W = 8
    Dk, Hk, Wk = 2, 3, 3   # kernel_size

    x = jax.random.normal(k1, (N, Cin, D, H, W), dtype=jnp.float32)
    v = jax.random.normal(k2, (Cout, Cin, Dk, Hk, Wk), dtype=jnp.float32) * 0.1
    bias = jax.random.normal(k3, (Cout,), dtype=jnp.float32) * 0.05
    # weight_norm initializes g = ||v|| so the effective weight equals v at init
    g = jnp.sqrt(jnp.sum(v * v, axis=(1, 2, 3, 4), keepdims=True))

    y = jax.block_until_ready(down_shifted_conv3d_old(x, v, g, bias))

    Dout = D - Dk + 1
    assert y.shape == (N, Cout, 3 * Dout, H, W), y.shape

    # Compare against the f32 reference (kernel uses bf16 MXU operands, bf16
    # bias/output storage with f32 accumulation -> loosened tolerance, O(1) values).
    y_ref = _reference(x, v, g, bias)
    max_err = float(jnp.max(jnp.abs(y - y_ref)))
    assert max_err < 5e-2, max_err
    # The three depth replicas must be identical (same conv applied 3x).
    assert bool(jnp.all(y[:, :, :Dout] == y[:, :, Dout:2 * Dout]))
    assert bool(jnp.all(y[:, :, :Dout] == y[:, :, 2 * Dout:]))

    print("KERNEL_OK")
</pallas_src>

<mosaic_0001>
module attributes {stable_mosaic.version = 11 : i64} {
  func.func @_conv_matmul_kernel(%arg0: i32, %arg1: i32, %arg2: memref<24x128xbf16, #tpu.memory_space<vmem>>, %arg3: memref<1x128x512xbf16, #tpu.memory_space<vmem>>, %arg4: memref<1x24x512xbf16, #tpu.memory_space<vmem>>) attributes {dimension_semantics = [#tpu.dimension_semantics<parallel>, #tpu.dimension_semantics<parallel>], iteration_bounds = array<i64: 2, 1>, scalar_prefetch = 0 : i64, scratch_operands = 0 : i64, tpu.core_type = #tpu.core_type<tc>, window_params = [{pipeline_mode = #tpu.pipeline_mode<synchronous>, transform_indices = @transform_0, window_bounds = array<i64: 24, 128>}, {transform_indices = @transform_1, window_bounds = array<i64: 1, 128, 512>}, {transform_indices = @transform_2, window_bounds = array<i64: 1, 24, 512>}]} {
    %c0 = arith.constant 0 : index
    %c0_0 = arith.constant 0 : index
    %0 = vector.load %arg2[%c0, %c0_0] : memref<24x128xbf16, #tpu.memory_space<vmem>>, vector<24x128xbf16>
    %c0_1 = arith.constant 0 : index
    %c0_2 = arith.constant 0 : index
    %c0_3 = arith.constant 0 : index
    %1 = vector.load %arg3[%c0_1, %c0_2, %c0_3] : memref<1x128x512xbf16, #tpu.memory_space<vmem>>, vector<1x128x512xbf16>
    %2 = vector.shape_cast %1 : vector<1x128x512xbf16> to vector<128x512xbf16>
    %cst = arith.constant dense<0.000000e+00> : vector<24x512xf32>
    %3 = tpu.matmul %0, %2, %cst {dimension_numbers = #tpu.dot_dimension_numbers<[1], [0], [0], [1], [0, 0, 1, 1], [], []>} : vector<24x128xbf16>, vector<128x512xbf16>, vector<24x512xf32> -> vector<24x512xf32>
    %4 = arith.truncf %3 : vector<24x512xf32> to vector<24x512xbf16>
    %c0_4 = arith.constant 0 : index
    %c0_5 = arith.constant 0 : index
    %c0_6 = arith.constant 0 : index
    %5 = vector.load %arg4[%c0_4, %c0_5, %c0_6] : memref<1x24x512xbf16, #tpu.memory_space<vmem>>, vector<1x24x512xbf16>
    %6 = vector.shape_cast %5 : vector<1x24x512xbf16> to vector<24x512xbf16>
    %7 = vector.shape_cast %4 : vector<24x512xbf16> to vector<1x24x512xbf16>
    tpu.vector_store %arg4[%c0_4, %c0_5, %c0_6], %7 {strides = array<i32>} : memref<1x24x512xbf16, #tpu.memory_space<vmem>>, vector<1x24x512xbf16>,
    return
  }
  func.func @transform_0(%arg0: i32, %arg1: i32) -> (i32, i32) {
    %c0_i32 = arith.constant 0 : i32
    %c0_i32_0 = arith.constant 0 : i32
    %c0_i32_1 = arith.constant 0 : i32
    return %c0_i32, %c0_i32_0 : i32, i32
  }
  func.func @transform_1(%arg0: i32, %arg1: i32) -> (i32, i32, i32) {
    %c0_i32 = arith.constant 0 : i32
    %c0_i32_0 = arith.constant 0 : i32
    return %arg0, %c0_i32, %arg1 : i32, i32, i32
  }
  func.func @transform_2(%arg0: i32, %arg1: i32) -> (i32, i32, i32) {
    %c0_i32 = arith.constant 0 : i32
    %c0_i32_0 = arith.constant 0 : i32
    return %arg0, %c0_i32, %arg1 : i32, i32, i32
  }
}

</mosaic_0001>

<bundles_post_ra>
// kernel: down_shifted_conv3d_old.1
= control target key start
LH: loop header
LB: loop body
LE: loop exit
PB: predicated region body
PF: predicated region fallthrough
CT: control target
= control target key end

     0   :  { %s797_s9 = smov 0   ;;  %s799_s10 = smov 0   ;;  %s878_s0 = inlined_call_operand.vmem [shape: bf16[24,128], index: 0, kind: input, shape index: {}]   ;;  %s879_s1 = inlined_call_operand.vmem [shape: bf16[2,128,512], index: 1, kind: input, shape index: {}]   ;;  %s880_s2 = inlined_call_operand.vmem [shape: bf16[2,24,512], index: 2, kind: output, shape index: {}]  }
   0x1   :  { %s801_s11 = smov 0  }
   0x2 LB: > { %s24_s12 = sadd.s32 1, %s775_s10  ;;  %p628_p0 = scmp.ge.s32.totalorder %s779_s11, 1  ;;  %s779_s11 = sphi %s801_s11, %s12_s11   ;;  %s775_s10 = sphi %s799_s10, %s882_s10   ;;  %s771_s9 = sphi %s797_s9, %s881_s9  }
   0x3   : > { %p26_p1 = scmp.ge.s32.totalorder %s24_s12, 2  ;;  %p133_p2 = scmp.lt.s32.totalorder %s779_s11, 3 }
   0x5   : > { %s884_s12 = smov (%p26_p1, %s24_s12), 0  ;;  %p134_p3 = pnand %p628_p0, %p133_p2 }
   0x6   : > { %p164_p4 = scmp.lt.s32.totalorder (!%p134_p3), %s771_s9, 1  ;;  %v781_v0 = vmov (!%p134_p3), 0   ;;  %v755_v33 = vld [vmem:[%s878_s0] sm:$0xff] (!%p134_p3)   ;;  %v756_v34 = vld [vmem:[%s878_s0 + $0x8] ss:$0 sps:$4 sm:$0xff] (!%p134_p3)  }
   0x7   : > { %137 = sbr.rel (%p134_p3) target bundleno = 274 (0x112), region = 28  ;;  %421 = vmatprep.mubr.bf16.mxu0 (!%p134_p3), %v781_v0  ;;  %472 = vmatprep.mubr.bf16.mxu1 (!%p134_p3), %v781_v0 }
   0xe   : > { %s886_s9 = smov (!%p164_p4, %s771_s9), 1 }
   0xf   : > { %s674_s13 = sshll.u32 %s886_s9, 8  ;;  %s681_s21 = smul.u32 48, %s886_s9 }
  0x10   : > { %s823_s16 = scalar_lea.vmem %s879_s1, %s674_s13 }
  0x11   : > { %v707_v1 = vld [vmem:[%s823_s16 + $0x4] ss:$16 sps:$4 sm:$0xff]   ;;  %v709_v2 = vld [vmem:[%s823_s16 + $0xc] ss:$16 sps:$4 sm:$0xff]   ;;  %v711_v3 = vld [vmem:[%s823_s16] ss:$16 sps:$4 sm:$0xff]   ;;  %s181_s24 = scalar_lea.vmem %s880_s2, %s681_s21 }
  0x12   : > { %389 = vmatprep.subr.bf16.mxu0 %v707_v1  ;;  %v712_v4 = vld [vmem:[%s823_s16 + $0x8] ss:$16 sps:$4 sm:$0xff]   ;;  %440 = vmatprep.subr.bf16.mxu1 %v709_v2  ;;  %v713_v5 = vld [vmem:[%s823_s16 + $0x24] ss:$16 sps:$4 sm:$0xff]   ;;  %v715_v6 = vld [vmem:[%s823_s16 + $0x2c] ss:$16 sps:$4 sm:$0xff]  }
  0x13   : > { %390 = vmatpush1.bf16.msra.mxu0 %v711_v3  ;;  %441 = vmatpush1.bf16.msra.mxu1 %v712_v4  ;;  %v717_v7 = vld [vmem:[%s823_s16 + $0x20] ss:$16 sps:$4 sm:$0xff]   ;;  %v718_v8 = vld [vmem:[%s823_s16 + $0x28] ss:$16 sps:$4 sm:$0xff]   ;;  %v719_v9 = vld [vmem:[%s823_s16 + $0x44] ss:$16 sps:$4 sm:$0xff]  }
  0x14   : > { %391 = vmatprep.subr.bf16.mxu0 %v713_v5  ;;  %442 = vmatprep.subr.bf16.mxu1 %v715_v6  ;;  %v721_v10 = vld [vmem:[%s823_s16 + $0x4c] ss:$16 sps:$4 sm:$0xff]   ;;  %v723_v11 = vld [vmem:[%s823_s16 + $0x40] ss:$16 sps:$4 sm:$0xff]   ;;  %v724_v12 = vld [vmem:[%s823_s16 + $0x48] ss:$16 sps:$4 sm:$0xff]  }
  0x15   : > { %v725_v13 = vld [vmem:[%s823_s16 + $0x64] ss:$16 sps:$4 sm:$0xff]   ;;  %v727_v14 = vld [vmem:[%s823_s16 + $0x6c] ss:$16 sps:$4 sm:$0xff]   ;;  %v729_v15 = vld [vmem:[%s823_s16 + $0x60] ss:$16 sps:$4 sm:$0xff]  }
  0x16   : > { %v730_v16 = vld [vmem:[%s823_s16 + $0x68] ss:$16 sps:$4 sm:$0xff]   ;;  %v731_v17 = vld [vmem:[%s823_s16 + $0x84] ss:$16 sps:$4 sm:$0xff]   ;;  %v733_v18 = vld [vmem:[%s823_s16 + $0x8c] ss:$16 sps:$4 sm:$0xff]  }
  0x17   : > { %392 = vmatpush1.bf16.msra.mxu0 %v717_v7  ;;  %443 = vmatpush1.bf16.msra.mxu1 %v718_v8  ;;  %v735_v19 = vld [vmem:[%s823_s16 + $0x80] ss:$16 sps:$4 sm:$0xff]   ;;  %v736_v20 = vld [vmem:[%s823_s16 + $0x88] ss:$16 sps:$4 sm:$0xff]   ;;  %v737_v21 = vld [vmem:[%s823_s16 + $0xa4] ss:$16 sps:$4 sm:$0xff]  }
  0x18   : > { %393 = vmatprep.subr.bf16.mxu0 %v719_v9  ;;  %444 = vmatprep.subr.bf16.mxu1 %v721_v10  ;;  %v739_v22 = vld [vmem:[%s823_s16 + $0xac] ss:$16 sps:$4 sm:$0xff]   ;;  %v741_v23 = vld [vmem:[%s823_s16 + $0xa0] ss:$16 sps:$4 sm:$0xff]   ;;  %v742_v24 = vld [vmem:[%s823_s16 + $0xa8] ss:$16 sps:$4 sm:$0xff]  }
  0x19   : > { %v743_v25 = vld [vmem:[%s823_s16 + $0xc4] ss:$16 sps:$4 sm:$0xff]   ;;  %v745_v26 = vld [vmem:[%s823_s16 + $0xcc] ss:$16 sps:$4 sm:$0xff]   ;;  %v747_v27 = vld [vmem:[%s823_s16 + $0xc0] ss:$16 sps:$4 sm:$0xff]  }
  0x1a   : > { %v748_v28 = vld [vmem:[%s823_s16 + $0xc8] ss:$16 sps:$4 sm:$0xff]   ;;  %v749_v29 = vld [vmem:[%s823_s16 + $0xe4] ss:$16 sps:$4 sm:$0xff]   ;;  %v751_v30 = vld [vmem:[%s823_s16 + $0xec] ss:$16 sps:$4 sm:$0xff]  }
  0x1b   : > { %394 = vmatpush1.bf16.msra.mxu0 %v723_v11  ;;  %445 = vmatpush1.bf16.msra.mxu1 %v724_v12  ;;  %v753_v31 = vld [vmem:[%s823_s16 + $0xe0] ss:$16 sps:$4 sm:$0xff]   ;;  %v754_v32 = vld [vmem:[%s823_s16 + $0xe8] ss:$16 sps:$4 sm:$0xff]  }
  0x1c   : > { %395 = vmatprep.subr.bf16.mxu0 %v725_v13  ;;  %446 = vmatprep.subr.bf16.mxu1 %v727_v14 }
  0x1f   : > { %396 = vmatpush1.bf16.msra.mxu0 %v729_v15  ;;  %447 = vmatpush1.bf16.msra.mxu1 %v730_v16 }
  0x20   : > { %397 = vmatprep.subr.bf16.mxu0 %v731_v17  ;;  %448 = vmatprep.subr.bf16.mxu1 %v733_v18 }
  0x23   : > { %398 = vmatpush1.bf16.msra.mxu0 %v735_v19  ;;  %449 = vmatpush1.bf16.msra.mxu1 %v736_v20 }
  0x24   : > { %399 = vmatprep.subr.bf16.mxu0 %v737_v21  ;;  %450 = vmatprep.subr.bf16.mxu1 %v739_v22 }
  0x27   : > { %400 = vmatpush1.bf16.msra.mxu0 %v741_v23  ;;  %451 = vmatpush1.bf16.msra.mxu1 %v742_v24 }
  0x28   : > { %401 = vmatprep.subr.bf16.mxu0 %v743_v25  ;;  %452 = vmatprep.subr.bf16.mxu1 %v745_v26 }
  0x2b   : > { %402 = vmatpush1.bf16.msra.mxu0 %v747_v27  ;;  %453 = vmatpush1.bf16.msra.mxu1 %v748_v28 }
  0x2c   : > { %403 = vmatprep.subr.bf16.mxu0 %v749_v29  ;;  %454 = vmatprep.subr.bf16.mxu1 %v751_v30 }
  0x2f   : > { %404 = vmatpush1.bf16.msra.mxu0 %v753_v31  ;;  %455 = vmatpush1.bf16.msra.mxu1 %v754_v32 }
  0x32   : > { %422 = vmatmul.mubr.bf16.vlgmr.msra.gmra.mrb[0].mxu0 %v755_v33  ;;  %473 = vmatmul.mubr.bf16.vlgmr.msra.gmra.mrb[0].mxu1 %v755_v33 }
  0x33   : > { %431 = vmatprep.mubr.bf16.mxu0 %v781_v0  ;;  %482 = vmatprep.mubr.bf16.mxu1 %v781_v0 }
  0x3a   : > { %432 = vmatmul.mubr.bf16.gmra.mrb[4].mxu0 %v756_v34  ;;  %483 = vmatmul.mubr.bf16.gmra.mrb[4].mxu1 %v756_v34 }
 0x105   : > { %v423_v35 = vpop.f32.mrb[0].mxu0  ;;  %v474_v36 = vpop.f32.mrb[0].mxu1 }
 0x106   : > { %v425_v37 = vpop.f32.mrb[1].mxu0  ;;  %v476_v38 = vpop.f32.mrb[1].mxu1 }
 0x107   : > { %v675_v39 = vpack.c.bf16 %v425_v37, %v423_v35  ;;  %v676_v40 = vpack.c.bf16 %v476_v38, %v474_v36  ;;  %v427_v41 = vpop.f32.mrb[2].mxu0  ;;  %v478_v42 = vpop.f32.mrb[2].mxu1 }
 0x108   : > { %v429_v43 = vpop.f32.mrb[3].mxu0  ;;  %v480_v44 = vpop.f32.mrb[3].mxu1 }
 0x109   : > { %531 = vst [vmem:[%s181_s24] sm:$0xff] %v675_v39  ;;  %532 = vst [vmem:[%s181_s24 + $0x8] sm:$0xff] %v676_v40  ;;  %v677_v45 = vpack.c.bf16 %v429_v43, %v427_v41  ;;  %v678_v46 = vpack.c.bf16 %v480_v44, %v478_v42 }
 0x10b   : > { %533 = vst [vmem:[%s181_s24 + $0x10] sm:$0xff] %v677_v45  ;;  %534 = vst [vmem:[%s181_s24 + $0x18] sm:$0xff] %v678_v46 }
 0x10d   : > { %v433_v47 = vpop.f32.mrb[4].mxu0  ;;  %v484_v48 = vpop.f32.mrb[4].mxu1 }
 0x10e   : > { %v435_v49 = vpop.f32.mrb[5].mxu0  ;;  %v486_v50 = vpop.f32.mrb[5].mxu1 }
 0x10f   : > { %v679_v51 = vpack.c.bf16 %v435_v49, %v433_v47  ;;  %v680_v52 = vpack.c.bf16 %v486_v50, %v484_v48  ;;  %v437_v53 = vpop.f32.mrb[6].mxu0  ;;  %v488_v54 = vpop.f32.mrb[6].mxu1 }
 0x110   : > { %v438_v55 = vpop.f32.mrb[7].mxu0  ;;  %v489_v56 = vpop.f32.mrb[7].mxu1 }
 0x111   : > { %535 = vst [vmem:[%s181_s24 + $0x20] sm:$0xff] %v679_v51  ;;  %536 = vst [vmem:[%s181_s24 + $0x28] sm:$0xff] %v680_v52 }
 0x112 PF: > { %s12_s11 = sadd.s32 1, %s779_s11   ;;  %s881_s9 = smov %s775_s10 }
 0x113   : > { %p9_p5 = scmp.ge.s32.totalorder %s12_s11, 4   ;;  %s882_s10 = smov %s884_s12 }
 0x115   :  { %11 = sbr.rel (!%p9_p5) target bundleno = 2 (0x2), region = 58 }

</bundles_post_ra>
